<compile_context>
chip_gen: v7x
topology: tpu7x:2x2x1
jax: 0.10.0
libtpu: 0.0.40
codegen_flags: <defaults>
</compile_context>

<pallas_src>
import jax
import jax.numpy as jnp
from jax.experimental import pallas as pl
from jax.experimental.pallas import tpu as pltpu


def mlp_kernel(x_ref, w1_ref, b1_ref, w2_ref, b2_ref, o_ref):
    # x_ref : (1, TN)   batch tile on the lane axis
    # w1_ref: (H, 1)    first-layer weight column  (PyTorch hidden.weight, n_input=1)
    # b1_ref: (H, 1)    first-layer bias column
    # w2_ref: (H, 1)    second-layer weight column (PyTorch output.weight^T, n_output=1)
    # b2_ref: (1, 1)    second-layer bias scalar, in SMEM
    # o_ref : (1, TN)   lane-dense output tile
    x = x_ref[...]                                              # (1, TN)

    # hidden = relu(W1 * x + b1): K=1 contraction -> pure VPU broadcast multiply,
    # (H,1)*(1,TN) broadcasts to (H,TN). No MXU round-trip.
    h = jnp.maximum(w1_ref[...] * x + b1_ref[...], 0.0)         # (H, TN)

    # out = sum_H(W2 * h) + b2: VALU multiply + sublane (XLU) reduction,
    # scalar bias read from SMEM folds into the same bundles.
    out = jnp.sum(w2_ref[...] * h, axis=0, keepdims=True) + b2_ref[0, 0]  # (1, TN)

    o_ref[...] = out.astype(o_ref.dtype)


def net_forward(x, w1, b1, w2, b2, *, block_n=512):
    """Forward pass of Net(n_input=1, n_hidden=H, n_output=1).

    x : (N, 1)   input, PyTorch layout
    w1: (H, 1)   hidden.weight   (PyTorch (out_features, in_features))
    b1: (H,)     hidden.bias
    w2: (1, H)   output.weight
    b2: (1,)     output.bias
    returns (N, 1), matching the PyTorch module output.
    """
    n, n_in = x.shape
    n_hidden = w1.shape[0]
    n_out = w2.shape[0]
    assert n_in == 1 and n_out == 1, "kernel specialized for the 1 -> H -> 1 Net"

    # Re-layout for the kernel (all of these are pure reshapes since one dim is 1).
    x_row = x.reshape(1, n)                    # batch on the lane axis (lane-dense)
    w1_col = w1.reshape(n_hidden, 1)
    b1_col = b1.reshape(n_hidden, 1)
    w2_col = w2.reshape(n_hidden, 1)
    b2_s = b2.reshape(1, 1)

    tn = min(block_n, n)                       # lane tile; full extent if N is small
    grid = (pl.cdiv(n, tn),)

    out_row = pl.pallas_call(
        mlp_kernel,
        out_shape=jax.ShapeDtypeStruct((1, n), x.dtype),
        grid=grid,
        in_specs=[
            # batch tile marches along the lane axis
            pl.BlockSpec((1, tn), lambda i: (0, i)),
            # weights / bias columns: block index never changes -> stay VMEM-resident
            pl.BlockSpec((n_hidden, 1), lambda i: (0, 0)),
            pl.BlockSpec((n_hidden, 1), lambda i: (0, 0)),
            pl.BlockSpec((n_hidden, 1), lambda i: (0, 0)),
            # single scalar bias lives in SMEM (no padded VMEM tile / DMA)
            pl.BlockSpec(memory_space=pltpu.MemorySpace.SMEM),
        ],
        out_specs=pl.BlockSpec((1, tn), lambda i: (0, i)),
        compiler_params=pltpu.CompilerParams(
            dimension_semantics=("parallel",),   # let v7x shard the batch axis across TCs
        ),
    )(x_row, w1_col, b1_col, w2_col, b2_s)

    return out_row.reshape(n, 1)


def init_params(key, n_input, n_hidden, n_output):
    """PyTorch-Linear-style init (U[-1/sqrt(fan_in), 1/sqrt(fan_in)]), PyTorch shapes."""
    k1, k2, k3, k4 = jax.random.split(key, 4)
    bound1 = 1.0 / (n_input ** 0.5)
    bound2 = 1.0 / (n_hidden ** 0.5)
    w1 = jax.random.uniform(k1, (n_hidden, n_input), jnp.float32, -bound1, bound1)
    b1 = jax.random.uniform(k2, (n_hidden,), jnp.float32, -bound1, bound1)
    w2 = jax.random.uniform(k3, (n_output, n_hidden), jnp.float32, -bound2, bound2)
    b2 = jax.random.uniform(k4, (n_output,), jnp.float32, -bound2, bound2)
    return w1, b1, w2, b2


if __name__ == "__main__":
    # Shapes implied by the script: Net(1, H, 1) over x = linspace(-1, 1, N).unsqueeze(1).
    # Use N=1024 (close to the script's 1000, divides the 512-lane tile evenly), H=32.
    batch, n_input, n_hidden, n_output = 1024, 1, 32, 1

    key = jax.random.PRNGKey(0)
    w1, b1, w2, b2 = init_params(key, n_input, n_hidden, n_output)

    # Deterministic input, analogous to torch.unsqueeze(torch.linspace(-1, 1, N), dim=1)
    x = jnp.linspace(-1.0, 1.0, batch, dtype=jnp.float32).reshape(batch, n_input)

    out = net_forward(x, w1, b1, w2, b2)
    jax.block_until_ready(out)

    # Cross-check against a plain-JAX reference (same math as the PyTorch forward).
    ref = jnp.maximum(x @ w1.T + b1, 0.0) @ w2.T + b2
    assert out.shape == (batch, n_output)
    assert jnp.allclose(out, ref, atol=1e-5, rtol=1e-5)

    print("KERNEL_OK")
</pallas_src>

<mosaic_0001>
module attributes {stable_mosaic.version = 11 : i64} {
  func.func @mlp_kernel(%arg0: i32, %arg1: memref<1x512xf32, #tpu.memory_space<vmem>>, %arg2: memref<32x1xf32, #tpu.memory_space<vmem>>, %arg3: memref<32x1xf32, #tpu.memory_space<vmem>>, %arg4: memref<32x1xf32, #tpu.memory_space<vmem>>, %arg5: memref<1x1xf32, #tpu.memory_space<smem>>, %arg6: memref<1x512xf32, #tpu.memory_space<vmem>>) attributes {dimension_semantics = [#tpu.dimension_semantics<parallel>], iteration_bounds = array<i64: 2>, scalar_prefetch = 0 : i64, scratch_operands = 0 : i64, tpu.core_type = #tpu.core_type<tc>, window_params = [{transform_indices = @transform_0, window_bounds = array<i64: 1, 512>}, {pipeline_mode = #tpu.pipeline_mode<synchronous>, transform_indices = @transform_1, window_bounds = array<i64: 32, 1>}, {pipeline_mode = #tpu.pipeline_mode<synchronous>, transform_indices = @transform_2, window_bounds = array<i64: 32, 1>}, {pipeline_mode = #tpu.pipeline_mode<synchronous>, transform_indices = @transform_3, window_bounds = array<i64: 32, 1>}, {transform_indices = @transform_4, window_bounds = array<i64: 1, 1>}, {transform_indices = @transform_5, window_bounds = array<i64: 1, 512>}]} {
    %c0 = arith.constant 0 : index
    %c0_0 = arith.constant 0 : index
    %0 = vector.load %arg1[%c0, %c0_0] : memref<1x512xf32, #tpu.memory_space<vmem>>, vector<1x512xf32>
    %c0_1 = arith.constant 0 : index
    %c0_2 = arith.constant 0 : index
    %1 = vector.load %arg2[%c0_1, %c0_2] : memref<32x1xf32, #tpu.memory_space<vmem>>, vector<32x1xf32>
    %2 = vector.broadcast %1 : vector<32x1xf32> to vector<32x512xf32>
    %3 = vector.broadcast %0 : vector<1x512xf32> to vector<32x512xf32>
    %4 = arith.mulf %2, %3 : vector<32x512xf32>
    %c0_3 = arith.constant 0 : index
    %c0_4 = arith.constant 0 : index
    %5 = vector.load %arg3[%c0_3, %c0_4] : memref<32x1xf32, #tpu.memory_space<vmem>>, vector<32x1xf32>
    %6 = vector.broadcast %5 : vector<32x1xf32> to vector<32x512xf32>
    %7 = arith.addf %4, %6 : vector<32x512xf32>
    %cst = arith.constant 0.000000e+00 : f32
    %8 = vector.broadcast %cst : f32 to vector<32x512xf32>
    %9 = arith.maximumf %7, %8 : vector<32x512xf32>
    %c0_5 = arith.constant 0 : index
    %c0_6 = arith.constant 0 : index
    %10 = vector.load %arg4[%c0_5, %c0_6] : memref<32x1xf32, #tpu.memory_space<vmem>>, vector<32x1xf32>
    %11 = vector.broadcast %10 : vector<32x1xf32> to vector<32x512xf32>
    %12 = arith.mulf %11, %9 : vector<32x512xf32>
    %cst_7 = arith.constant dense<0.000000e+00> : vector<512xf32>
    %13 = vector.multi_reduction <add>, %12, %cst_7 [0] : vector<32x512xf32> to vector<512xf32>
    %14 = vector.shape_cast %13 : vector<512xf32> to vector<1x512xf32>
    %c0_8 = arith.constant 0 : index
    %c0_9 = arith.constant 0 : index
    %15 = memref.load %arg5[%c0_8, %c0_9] : memref<1x1xf32, #tpu.memory_space<smem>>
    %16 = vector.broadcast %15 : f32 to vector<1x512xf32>
    %17 = arith.addf %14, %16 : vector<1x512xf32>
    %c0_10 = arith.constant 0 : index
    %c0_11 = arith.constant 0 : index
    %18 = vector.load %arg6[%c0_10, %c0_11] : memref<1x512xf32, #tpu.memory_space<vmem>>, vector<1x512xf32>
    tpu.vector_store %arg6[%c0_10, %c0_11], %17 {strides = array<i32>} : memref<1x512xf32, #tpu.memory_space<vmem>>, vector<1x512xf32>,
    return
  }
  func.func @transform_0(%arg0: i32) -> (i32, i32) {
    %c0_i32 = arith.constant 0 : i32
    %c0_i32_0 = arith.constant 0 : i32
    return %c0_i32, %arg0 : i32, i32
  }
  func.func @transform_1(%arg0: i32) -> (i32, i32) {
    %c0_i32 = arith.constant 0 : i32
    %c0_i32_0 = arith.constant 0 : i32
    %c0_i32_1 = arith.constant 0 : i32
    return %c0_i32, %c0_i32_0 : i32, i32
  }
  func.func @transform_2(%arg0: i32) -> (i32, i32) {
    %c0_i32 = arith.constant 0 : i32
    %c0_i32_0 = arith.constant 0 : i32
    %c0_i32_1 = arith.constant 0 : i32
    return %c0_i32, %c0_i32_0 : i32, i32
  }
  func.func @transform_3(%arg0: i32) -> (i32, i32) {
    %c0_i32 = arith.constant 0 : i32
    %c0_i32_0 = arith.constant 0 : i32
    %c0_i32_1 = arith.constant 0 : i32
    return %c0_i32, %c0_i32_0 : i32, i32
  }
  func.func @transform_4(%arg0: i32) -> (i32, i32) {
    %c0_i32 = arith.constant 0 : i32
    %c0_i32_0 = arith.constant 0 : i32
    %c0_i32_1 = arith.constant 0 : i32
    return %c0_i32, %c0_i32_0 : i32, i32
  }
  func.func @transform_5(%arg0: i32) -> (i32, i32) {
    %c0_i32 = arith.constant 0 : i32
    %c0_i32_0 = arith.constant 0 : i32
    return %c0_i32, %arg0 : i32, i32
  }
}

</mosaic_0001>

<bundles_post_ra>
// kernel: tpu_custom_call.1
= control target key start
LH: loop header
LB: loop body
LE: loop exit
PB: predicated region body
PF: predicated region fallthrough
CT: control target
= control target key end

     0   :  { %s828_s0 = inlined_call_operand.vmem [shape: f32[1,1024], index: 0, kind: input, shape index: {}]   ;;  %s829_s1 = inlined_call_operand.vmem [shape: f32[32,1], index: 1, kind: input, shape index: {}]   ;;  %s830_s2 = inlined_call_operand.vmem [shape: f32[32,1], index: 2, kind: input, shape index: {}]   ;;  %s831_s3 = inlined_call_operand.vmem [shape: f32[32,1], index: 3, kind: input, shape index: {}]   ;;  %s832_s4 = inlined_call_operand.<no memory space> [shape: f32[1,1], index: 4, kind: input, shape index: {}]   ;;  %s833_s5 = inlined_call_operand.hbm [shape: f32[1,1024], index: 5, kind: output, shape index: {}]  }
   0x1   :  { %10 = sst [smem:[#allocation2]] %s832_s4 }
   0x2   :  { %11 = vsyncpa [#allocation4], 0 }
   0x3   :  { %13 = vsyncpa [#allocation4 + $0x1], 0  ;;  %s684_s20 = smov 0   ;;  %s686_s21 = smov 0  }
   0x4   :  { %s688_s22 = smov 0   ;;  %s690_s23 = smov 0  }
   0x5 LB: > { %s705_s4 = sadd.s32 4294967295, %s646_s23   ;;  %s529_s24 = sadd.s32 4294967294, %s646_s23   ;;  %s646_s23 = sphi %s690_s23, %s839_s23   ;;  %s642_s22 = sphi %s688_s22, %s838_s22   ;;  %s638_s21 = sphi %s686_s21, %s837_s21   ;;  %s634_s20 = sphi %s684_s20, %s836_s20  }
   0x6   : > { %s709_s25 = sadd.s32 1, %s646_s23   ;;  %s136_s26 = sadd.s32 1, %s642_s22 }
   0x7   : > { %s133_s27 = ssub.s32 %s646_s23, %s709_s25  ;;  %p146_p0 = scmp.ne.s32.totalorder %s642_s22, %s638_s21 }
   0x8   : > { %p134_p1 = scmp.eq.s32.totalorder %s133_s27, 0  ;;  %p147_p2 = scmp.eq.s32.totalorder %s705_s4, 1 }
   0x9   : > { %p152_p3 = scmp.ne.s32.totalorder %s638_s21, %s634_s20  ;;  %p153_p4 = scmp.eq.s32.totalorder %s529_s24, 1 }
   0xa   : > { %s720_s28 = scalar_select %p134_p1, %s642_s22, %s136_s26  }
   0xb   : > { %p722_p5 = por %p147_p2, %p146_p0  ;;  %p726_p6 = por %p153_p4, %p152_p3 }
   0xc   : > { %p532_p7 = scmp.ge.s32.totalorder %s646_s23, 1  ;;  %p191_p8 = scmp.lt.s32.totalorder %s646_s23, 3 }
   0xe   : > { %p192_p9 = pnand %p532_p7, %p191_p8 }
   0xf   : > { %v227_v0 = vld [vmem:[%s829_s1 + $0x10] sm:$0xff] (!%p192_p9)  ;;  %v225_v1 = vld [vmem:[%s829_s1] sm:$0xff] (!%p192_p9)  ;;  %v648_v2 = vmov (!%p192_p9), 0   ;;  %v226_v4 = vld [vmem:[%s829_s1 + $0x8] sm:$0xff] (!%p192_p9)  ;;  %s534_s13 = sshll.u32 (!%p192_p9), %s705_s4, 2  ;;  %v250_v13 = vlaneseq (!%p192_p9)  ;;  %s418_s17 = sld [smem:[#allocation2]] (!%p192_p9) }
  0x10   : > { %195 = sbr.rel (%p192_p9) target bundleno = 207 (0xcf), region = 40  ;;  %583 = vset.pattern.permute.xlu1 (!%p192_p9), %v648_v2  ;;  %582 = vset.pattern.permute.xlu0 (!%p192_p9), %v648_v2  ;;  %v286_v3 = vld [vmem:[%s830_s2] sm:$0xff] (!%p192_p9)  ;;  %v228_v5 = vld [vmem:[%s829_s1 + $0x18] sm:$0xff] (!%p192_p9)  ;;  %v287_v6 = vld [vmem:[%s830_s2 + $0x8] sm:$0xff] (!%p192_p9)  ;;  %p219_p10 = scmp.lt.s32.totalorder (!%p192_p9), %s534_s13, 7 }
  0x11   : > { %241 = vperm.xlu1 (!%p192_p9), %583, %v227_v0   ;;  %231 = vperm.xlu0 (!%p192_p9), %582, %v225_v1   ;;  %v289_v7 = vld [vmem:[%s830_s2 + $0x18] sm:$0xff] (!%p192_p9)  ;;  %v288_v8 = vld [vmem:[%s830_s2 + $0x10] sm:$0xff] (!%p192_p9)  ;;  %v343_v9 = vld [vmem:[%s831_s3 + $0x8] sm:$0xff] (!%p192_p9)  ;;  %v770_v14 = vshrl.u32 (!%p192_p9), %v250_v13, 7  ;;  %s215_s18 = sand.u32 (!%p192_p9), 1, %s638_s21   ;;  %s540_s24 = sshll.u32 (!%p192_p9), %s705_s4, 6 }
  0x12   : > { %v342_v10 = vld [vmem:[%s831_s3] sm:$0xff] (!%p192_p9)  ;;  %v345_v11 = vld [vmem:[%s831_s3 + $0x18] sm:$0xff] (!%p192_p9)  ;;  %v344_v12 = vld [vmem:[%s831_s3 + $0x10] sm:$0xff] (!%p192_p9)  ;;  %s533_s19 = sshll.u32 (!%p192_p9), %s215_s18, 2  ;;  %vm455_vm0 = vcmp.lt.s32.totalorder (!%p192_p9), %v250_v13, 512  ;;  %s786_s8 = scalar_lea.hbm (!%p192_p9), %s833_s5, %s540_s24 }
  0x13   : > { %v252_v15 = vsub.s32 (!%p192_p9), 0, %v770_v14  ;;  %v256_v16 = vsub.s32 (!%p192_p9), 1, %v770_v14  ;;  %v260_v17 = vsub.s32 (!%p192_p9), 2, %v770_v14  ;;  %v264_v18 = vsub.s32 (!%p192_p9), 3, %v770_v14  ;;  %s217_s26 = scalar_lea.vmem (!%p192_p9), [#allocation3], %s533_s19  ;;  %s459_s9 = scalar_lea.sflag (!%p192_p9), [#allocation4], %s215_s18 }
  0x14   : > { %s473_s27 = sshll.u32 (!%p192_p9), %s217_s26, 4  ;;  %s650_s4 = smov (!%p192_p9), [#allocation3]   ;;  %s788_s27 = int_to_ptr.vmem [resolvable:$true] %s473_s27 }
  0x15   : > { %292 = vperm.xlu1 (!%p192_p9), %583, %v286_v3   ;;  %236 = vperm.xlu0 (!%p192_p9), %582, %v226_v4   ;;  %s584_s10 = scalar_lea.vmem (!%p192_p9), %s788_s27, 64  ;;  %s588_s11 = sshll.u32 (!%p192_p9), %s650_s4, 4  ;;  %s589_s11 = int_to_ptr.vmem [resolvable:$false] %s588_s11 }
  0x16   : > { %p585_p11 = scmp.ne.s32.totalorder (!%p192_p9), %s788_s27, %s584_s10  ;;  %s590_s12 = scalar_lea.vmem (!%p192_p9), %s589_s11, 128 }
  0x17   : > { %s841_s13 = smov (!%p219_p10, %s534_s13), 7  ;;  %p591_p0 = scmp.lt.s32.totalorder %s788_s27, %s589_s11 }
  0x18   : > { %s221_s16 = scalar_lea.vmem %s828_s0, %s841_s13  ;;  %p586_p12 = pnand %p585_p11, %p722_p5 }
  0x19   : > { %246 = vperm.xlu1 %583, %v228_v5   ;;  %297 = vperm.xlu0 %582, %v287_v6   ;;  %v224_v19 = vld [vmem:[%s221_s16] sm:$0xf]  ;;  %p592_p1 = scmp.lt.s32.totalorder %s590_s12, %s584_s10 }
  0x1a   : > { %v253_v22 = vrot.slane %v224_v19, %v252_v15  ;;  %v257_v23 = vrot.slane %v224_v19, %v256_v16  ;;  %v261_v24 = vrot.slane %v224_v19, %v260_v17  ;;  %v265_v25 = vrot.slane %v224_v19, %v264_v18  ;;  %p587_p13 = pneg %p586_p12 }
  0x1b   : > { %p593_p2 = por %p592_p1, %p591_p0 }
  0x1d   : > { %307 = vperm.xlu1 %583, %v289_v7   ;;  %302 = vperm.xlu0 %582, %v288_v8   ;;  %p594_p3 = pnand %p593_p2, %p587_p13 }
  0x21   : > { %353 = vperm.xlu1 %583, %v343_v9   ;;  %348 = vperm.xlu0 %582, %v342_v10  }
  0x25   : > { %363 = vperm.xlu1 %583, %v345_v11   ;;  %358 = vperm.xlu0 %582, %v344_v12  }
  0x90   : > { %v242_v20 = vpop.permute.xlu1 %241  ;;  %v232_v21 = vpop.permute.xlu0 %231 }
  0x91   : > { %v270_v28 = vmul.f32 %v253_v22, %v232_v21  ;;  %v271_v29 = vmul.f32 %v257_v23, %v232_v21  ;;  %v272_v30 = vmul.f32 %v261_v24, %v232_v21  ;;  %v273_v31 = vmul.f32 %v265_v25, %v232_v21 }
  0x92   : > { %v278_v46 = vmul.f32 %v253_v22, %v242_v20  ;;  %v279_v47 = vmul.f32 %v257_v23, %v242_v20  ;;  %v280_v48 = vmul.f32 %v261_v24, %v242_v20  ;;  %v281_v49 = vmul.f32 %v265_v25, %v242_v20 }
  0x94   : > { %v293_v26 = vpop.permute.xlu1 %292  ;;  %v237_v27 = vpop.permute.xlu0 %236 }
  0x95   : > { %v310_v32 = vadd.f32 %v293_v26, %v270_v28  ;;  %v311_v33 = vadd.f32 %v293_v26, %v271_v29  ;;  %v312_v34 = vadd.f32 %v293_v26, %v272_v30  ;;  %v313_v35 = vadd.f32 %v293_v26, %v273_v31 }
  0x96   : > { %v274_v36 = vmul.f32 %v253_v22, %v237_v27  ;;  %v275_v37 = vmul.f32 %v257_v23, %v237_v27  ;;  %v276_v38 = vmul.f32 %v261_v24, %v237_v27  ;;  %v277_v39 = vmul.f32 %v265_v25, %v237_v27 }
  0x97   : > { %v326_v50 = vmax.f32 %v310_v32, 0.0  ;;  %v327_v51 = vmax.f32 %v311_v33, 0.0  ;;  %v328_v52 = vmax.f32 %v312_v34, 0.0  ;;  %v329_v53 = vmax.f32 %v313_v35, 0.0 }
  0x98   : > { %v247_v40 = vpop.permute.xlu1 %246  ;;  %v298_v41 = vpop.permute.xlu0 %297 }
  0x99   : > { %v314_v42 = vadd.f32 %v298_v41, %v274_v36  ;;  %v315_v43 = vadd.f32 %v298_v41, %v275_v37  ;;  %v316_v44 = vadd.f32 %v298_v41, %v276_v38  ;;  %v317_v45 = vadd.f32 %v298_v41, %v277_v39 }
  0x9a   : > { %v282_v56 = vmul.f32 %v253_v22, %v247_v40  ;;  %v283_v57 = vmul.f32 %v257_v23, %v247_v40  ;;  %v284_v58 = vmul.f32 %v261_v24, %v247_v40  ;;  %v285_v59 = vmul.f32 %v265_v25, %v247_v40 }
  0x9b   : > { %v330_v60 = vmax.f32 %v314_v42, 0.0  ;;  %v331_v61 = vmax.f32 %v315_v43, 0.0  ;;  %v332_v62 = vmax.f32 %v316_v44, 0.0  ;;  %v333_v63 = vmax.f32 %v317_v45, 0.0 }
  0x9c   : > { %v308_v54 = vpop.permute.xlu1 %307  ;;  %v303_v55 = vpop.permute.xlu0 %302 }
  0x9d   : > { %v322_v0 = vadd.f32 %v308_v54, %v282_v56  ;;  %v323_v1 = vadd.f32 %v308_v54, %v283_v57  ;;  %v324_v2 = vadd.f32 %v308_v54, %v284_v58  ;;  %v325_v3 = vadd.f32 %v308_v54, %v285_v59 }
  0x9e   : > { %v318_v4 = vadd.f32 %v303_v55, %v278_v46  ;;  %v319_v5 = vadd.f32 %v303_v55, %v279_v47  ;;  %v320_v6 = vadd.f32 %v303_v55, %v280_v48  ;;  %v321_v7 = vadd.f32 %v303_v55, %v281_v49 }
  0x9f   : > { %v338_v20 = vmax.f32 %v322_v0, 0.0  ;;  %v339_v21 = vmax.f32 %v323_v1, 0.0  ;;  %v340_v22 = vmax.f32 %v324_v2, 0.0  ;;  %v341_v23 = vmax.f32 %v325_v3, 0.0 }
  0xa0   : > { %v354_v8 = vpop.permute.xlu1 %353  ;;  %v349_v9 = vpop.permute.xlu0 %348  ;;  %v334_v26 = vmax.f32 %v318_v4, 0.0  ;;  %v335_v27 = vmax.f32 %v319_v5, 0.0  ;;  %v336_v28 = vmax.f32 %v320_v6, 0.0  ;;  %v337_v29 = vmax.f32 %v321_v7, 0.0 }
  0xa1   : > { %v370_v10 = vmul.f32 %v354_v8, %v330_v60  ;;  %v371_v11 = vmul.f32 %v354_v8, %v331_v61  ;;  %v372_v12 = vmul.f32 %v354_v8, %v332_v62  ;;  %v373_v15 = vmul.f32 %v354_v8, %v333_v63 }
  0xa2   : > { %v366_v16 = vmul.f32 %v349_v9, %v326_v50  ;;  %v367_v17 = vmul.f32 %v349_v9, %v327_v51  ;;  %v368_v18 = vmul.f32 %v349_v9, %v328_v52  ;;  %v369_v19 = vmul.f32 %v349_v9, %v329_v53 }
  0xa3   : > { %v649_v58 = vmov 1966171168   ;;  %v419_v9 = vstv %s418_s17 }
  0xa4   : > { %v364_v24 = vpop.permute.xlu1 %363  ;;  %v359_v25 = vpop.permute.xlu0 %358  ;;  %v382_v30 = vadd.f32 %v370_v10, %v366_v16  ;;  %v391_v31 = vadd.f32 %v371_v11, %v367_v17  ;;  %v400_v32 = vadd.f32 %v372_v12, %v368_v18  ;;  %v409_v33 = vadd.f32 %v373_v15, %v369_v19 }
  0xa5   : > { %v374_v34 = vmul.f32 %v359_v25, %v334_v26  ;;  %v375_v35 = vmul.f32 %v359_v25, %v335_v27  ;;  %v376_v36 = vmul.f32 %v359_v25, %v336_v28  ;;  %v377_v37 = vmul.f32 %v359_v25, %v337_v29 }
  0xa6   : > { %v378_v38 = vmul.f32 %v364_v24, %v338_v20  ;;  %v379_v39 = vmul.f32 %v364_v24, %v339_v21  ;;  %v380_v40 = vmul.f32 %v364_v24, %v340_v22  ;;  %v381_v41 = vmul.f32 %v364_v24, %v341_v23 }
  0xa7   : > { %v383_v42 = vadd.f32 %v382_v30, %v374_v34  ;;  %v392_v43 = vadd.f32 %v391_v31, %v375_v35  ;;  %v401_v44 = vadd.f32 %v400_v32, %v376_v36  ;;  %v410_v45 = vadd.f32 %v409_v33, %v377_v37 }
  0xa8   : > { %v431_v59 = vunpack.c.l.s4 %v649_v58 }
  0xa9   : > { %v384_v46 = vadd.f32 %v383_v42, %v378_v38  ;;  %v393_v47 = vadd.f32 %v392_v43, %v379_v39  ;;  %v402_v48 = vadd.f32 %v401_v44, %v380_v40  ;;  %v411_v49 = vadd.f32 %v410_v45, %v381_v41 }
  0xaa   : > { %v432_v4 = vunpack.c.0.s8 %v431_v59 }
  0xab   : > { %v385_v50 = vrot.slane %v384_v46, 4  ;;  %v394_v51 = vrot.slane %v393_v47, 4  ;;  %v403_v52 = vrot.slane %v402_v48, 4  ;;  %v412_v53 = vrot.slane %v411_v49, 4 }
  0xac   : > { %v435_v16 = vsub.s32 %v432_v4, %v770_v14 }
  0xad   : > { %v386_v54 = vadd.f32 %v385_v50, %v384_v46  ;;  %v395_v55 = vadd.f32 %v394_v51, %v393_v47  ;;  %v404_v56 = vadd.f32 %v403_v52, %v402_v48  ;;  %v413_v57 = vadd.f32 %v412_v53, %v411_v49 }
  0xaf   : > { %v387_v60 = vrot.slane %v386_v54, 2  ;;  %v396_v61 = vrot.slane %v395_v55, 2  ;;  %v405_v62 = vrot.slane %v404_v56, 2  ;;  %v414_v63 = vrot.slane %v413_v57, 2 }
  0xb1   : > { %v388_v0 = vadd.f32 %v387_v60, %v386_v54  ;;  %v397_v1 = vadd.f32 %v396_v61, %v395_v55  ;;  %v406_v2 = vadd.f32 %v405_v62, %v404_v56  ;;  %v415_v3 = vadd.f32 %v414_v63, %v413_v57 }
  0xb3   : > { %v389_v5 = vrot.slane %v388_v0, 1  ;;  %v398_v6 = vrot.slane %v397_v1, 1  ;;  %v407_v7 = vrot.slane %v406_v2, 1  ;;  %v416_v8 = vrot.slane %v415_v3, 1 }
  0xb5   : > { %v390_v10 = vadd.f32 %v389_v5, %v388_v0  ;;  %v399_v11 = vadd.f32 %v398_v6, %v397_v1  ;;  %v408_v12 = vadd.f32 %v407_v7, %v406_v2  ;;  %v417_v15 = vadd.f32 %v416_v8, %v415_v3 }
  0xb7   : > { %v420_v17 = vadd.f32 %v419_v9, %v390_v10  ;;  %v421_v18 = vadd.f32 %v419_v9, %v399_v11  ;;  %v422_v19 = vadd.f32 %v419_v9, %v408_v12  ;;  %v423_v20 = vadd.f32 %v419_v9, %v417_v15 }
  0xb9   : > { %v428_v21 = vcombine.low %v420_v17, %v421_v18  ;;  %v429_v22 = vcombine.low %v422_v19, %v423_v20 }
  0xbb   : > { %v436_v23 = vrot.slane %v428_v21, %v435_v16  ;;  %v443_v24 = vrot.slane %v429_v22, %v435_v16 }
  0xbd   : > { %v444_v25 = vcombine.low %v436_v23, %v443_v24 }
  0xbf   : > { %v451_v26 = vrot.slane %v444_v25, %v435_v16 }
  0xc1   : > { %457 = vst.msk [vmem:[%s217_s26] sm:$0xf] %vm455_vm0, %v451_v26 }
  0xc2   : > { %597 = shalt.err (!%p594_p3)
}
  0xc3   : > { %s598_s13 = scalar_lea.hbm %s786_s8, 64  ;;  %s602_s16 = scalar_lea.hbm %s833_s5, 128 }
  0xc4   : > { %p599_p4 = scmp.ne.s32.totalorder %s786_s8, %s598_s13  ;;  %p603_p9 = scmp.lt.u32.totalorder %s786_s8, %s833_s5 }
  0xc5   : > { %p604_p10 = scmp.lt.u32.totalorder %s602_s16, %s598_s13  ;;  %p606_p12 = scmp.lt.u32.totalorder %s598_s13, %s786_s8 }
  0xc6   : > { %p600_p7 = pnand %p599_p4, %p722_p5 }
  0xc7   : > { %p605_p11 = por %p604_p10, %p603_p9 }
  0xc8   : > { %p601_p8 = pneg %p600_p7 }
  0xc9   : > { %p607_p13 = por %p606_p12, %p605_p11 }
  0xcb   : > { %p608_p0 = pnand %p607_p13, %p601_p8 }
  0xcd   : > { %611 = shalt.err (!%p608_p0)
}
  0xce   : > { %541 = dma.vmem_to_hbm [thread:$0]  (%p722_p5), %s788_s27, 64, %s786_s8, %s459_s9  }
  0xcf PF: > { %p547_p1 = scmp.ge.s32.totalorder %s646_s23, 2  ;;  %s485_s19 = sand.u32 1, %s634_s20  }
  0xd0   : > { %s486_s24 = scalar_lea.sflag [#allocation4], %s485_s19 }
  0xd1   : > { %p544_p2 = pnand %p547_p1, %p726_p6 }
  0xd3   : > { %629 = dma.done.wait (!%p544_p2), %s486_s24, 64  }
  0xd4   : > { %631 = vsyncadd (!%p544_p2), %s486_s24, 4294967232  ;;  %p16_p3 = scmp.ge.s32.totalorder %s709_s25, 4   ;;  %s836_s20 = smov %s638_s21 }
  0xd5   : > { %s837_s21 = smov %s642_s22  ;;  %s838_s22 = smov %s720_s28 }
  0xd6   : > { %s839_s23 = smov %s709_s25  ;;  %18 = sbr.rel (!%p16_p3) target bundleno = 5 (0x5), region = 75 }
  0xdd   :  { %491 = vsyncpa [#allocation4], 1 }
  0xde   :  { %493 = vsyncpa [#allocation4 + $0x1], 1 }

</bundles_post_ra>
